<compile_context>
chip_gen: v7x
topology: tpu7x:2x2x1
jax: 0.10.0
libtpu: 0.0.40
codegen_flags: <defaults>
</compile_context>

<pallas_src>
import functools

import numpy as np
import jax
import jax.numpy as jnp
from jax import lax
from jax.experimental import pallas as pl
from jax.experimental.pallas import tpu as pltpu


def _round_up(x, m):
    return (x + m - 1) // m * m


# ----------------------------------------------------------------------------
# In-kernel pooling helpers (trace-time static shapes; last dim = 128 lanes)
# ----------------------------------------------------------------------------
def _pool_3_2(y, p_out):
    """MaxPool1d(kernel=3, stride=2) over axis 1 of [B, L, C] (floor mode)."""
    B, L, C = y.shape
    # stride-1 window max via 3 contiguous slices (pure VPU max ops)
    win = jnp.maximum(jnp.maximum(y[:, 0:L - 2], y[:, 1:L - 1]), y[:, 2:L])
    w = L - 2
    need = 2 * p_out
    assert need - w <= 1, "pool_3_2 pad-by-one assumption violated"
    if need > w:  # pad by one row; padded row lands on an odd (discarded) slot
        win = jnp.concatenate([win, win[:, w - 1:w]], axis=1)
    # keep every other window start (de-interleave via tile-aligned reshape)
    return win[:, 0:need].reshape(B, p_out, 2, C)[:, :, 0, :]


def _pool_2_2(y, p_out):
    """MaxPool1d(kernel=2, stride=2) over axis 1 of [B, L, C] (floor mode)."""
    B, L, C = y.shape
    return jnp.max(y[:, 0:2 * p_out].reshape(B, p_out, 2, C), axis=2)


# ----------------------------------------------------------------------------
# Fused readout kernel (one grid step = one batch tile)
# ----------------------------------------------------------------------------
def _devign_readout_kernel(c_ref, w1_ref, b1_ref, w2_ref, b2_ref,
                           hw_ref, hb_ref, seg_ref, out_ref, *, nl_sum, half):
    bt, N, Cp = c_ref.shape
    Dp = out_ref.shape[-1]
    L1 = N - 2                       # Conv1d(k=3), valid
    P1 = (L1 - 3) // 2 + 1           # MaxPool1d(3, 2)
    P2 = (P1 - 2) // 2 + 1           # MaxPool1d(2, 2)

    x = c_ref[...]                                               # [bt, N, 128k]

    # ---- im2col for the fused k=3 conv: every slab is a full 128-lane tile ----
    xcol = jnp.concatenate([x[:, 0:L1], x[:, 1:L1 + 1], x[:, 2:L1 + 2]],
                           axis=-1)                              # [bt, L1, 3*Cp]

    # ---- stage 1: fused Y/Z Conv1d(k=3) + bias + ReLU (single matmul) ----
    a1 = jnp.dot(xcol.reshape(bt * L1, 3 * Cp), w1_ref[...],
                 preferred_element_type=jnp.float32)
    a1 = jnp.maximum(a1.reshape(bt, L1, Dp) + b1_ref[...], 0.0)

    # ---- MaxPool1d(3, 2), one pass over the packed slab ----
    p1 = _pool_3_2(a1, P1)                                       # [bt, P1, Dp]

    # ---- stage 2: fused Y/Z Conv1d(k=1) (block-diagonal weight) + ReLU ----
    a2 = jnp.dot(p1.reshape(bt * P1, Dp), w2_ref[...],
                 preferred_element_type=jnp.float32)
    a2 = jnp.maximum(a2.reshape(bt, P1, Dp) + b2_ref[...], 0.0)

    # ---- MaxPool1d(2, 2) ----
    p2 = _pool_2_2(a2, P2)                                       # [bt, P2, Dp]

    # ---- all 7 heads for both paths in one matmul: lanes [0:nl_sum] = ly,
    #      lanes [half:half+nl_sum] = lz; roll-by-half + multiply = ly*lz ----
    h = jnp.dot(p2.reshape(bt * P2, Dp), hw_ref[...],
                preferred_element_type=jnp.float32) + hb_ref[...]
    prod = h * pltpu.roll(h, shift=half, axis=1)
    logits = jnp.sum(prod.reshape(bt, P2, Dp), axis=1) * (1.0 / P2)   # [bt, Dp]

    # ---- segmented (per-task) softmax on the packed lane slab ----
    lane = lax.broadcasted_iota(jnp.int32, (1, Dp), 1)
    valid = lane < nl_sum
    neg = jnp.where(valid, 0.0, -1e30).astype(jnp.float32)
    pad1 = jnp.where(valid, 0.0, 1.0).astype(jnp.float32)
    # per-row max over valid lanes (a constant per row => softmax-invariant)
    m = jnp.max(logits + neg, axis=-1, keepdims=True)
    e = jnp.exp(logits - m + neg)                  # padded lanes -> exp(-1e30)=0
    # block-diagonal 0/1 segment-sum matrix: one matmul instead of 7 reductions
    denom = jnp.dot(e, seg_ref[...], preferred_element_type=jnp.float32) + pad1
    r = pl.reciprocal(denom, approx=True)
    r = r * (2.0 - denom * r)                      # one Newton step -> ~f32 exact
    out_ref[...] = (e * r).reshape(bt, 1, Dp).astype(out_ref.dtype)


# ----------------------------------------------------------------------------
# Host-side weight packing (tiny; fused by XLA under jit)
# ----------------------------------------------------------------------------
def _pack_weights(params, H, C, Cp, Dp, half, nl_sum):
    f32 = jnp.float32
    # stage 1: [3*Cp, Dp]; y conv reads input lanes [0:H], z conv lanes [0:C]
    w1 = jnp.zeros((3, Cp, Dp), f32)
    w1 = w1.at[:, :H, :H].set(params["y_w1"].astype(f32))
    w1 = w1.at[:, :C, H:H + C].set(params["z_w1"].astype(f32))
    w1 = w1.reshape(3 * Cp, Dp)
    b1 = jnp.zeros((1, Dp), f32)
    b1 = b1.at[:, :H].set(params["y_b1"].astype(f32))
    b1 = b1.at[:, H:H + C].set(params["z_b1"].astype(f32))
    # stage 2: block-diagonal [Dp, Dp]
    w2 = jnp.zeros((Dp, Dp), f32)
    w2 = w2.at[:H, :H].set(params["y_w2"].astype(f32))
    w2 = w2.at[H:H + C, H:H + C].set(params["z_w2"].astype(f32))
    b2 = jnp.zeros((1, Dp), f32)
    b2 = b2.at[:, :H].set(params["y_b2"].astype(f32))
    b2 = b2.at[:, H:H + C].set(params["z_b2"].astype(f32))
    # heads: ly -> lanes [0:nl_sum], lz -> lanes [half:half+nl_sum]
    hwy = jnp.concatenate([h[0] for h in params["heads"]], axis=1).astype(f32)
    hby = jnp.concatenate([h[1] for h in params["heads"]], axis=1).astype(f32)
    hwz = jnp.concatenate([h[2] for h in params["heads"]], axis=1).astype(f32)
    hbz = jnp.concatenate([h[3] for h in params["heads"]], axis=1).astype(f32)
    hw = jnp.zeros((Dp, Dp), f32)
    hw = hw.at[:H, :nl_sum].set(hwy)
    hw = hw.at[H:H + C, half:half + nl_sum].set(hwz)
    hb = jnp.zeros((1, Dp), f32)
    hb = hb.at[:, :nl_sum].set(hby)
    hb = hb.at[:, half:half + nl_sum].set(hbz)
    return w1, b1, w2, b2, hw, hb


def _segment_sum_matrix(num_labels, Dp):
    """0/1 block-diagonal [Dp, Dp] matrix: column j sums lanes of j's task."""
    S = np.zeros((Dp, Dp), np.float32)
    off = 0
    for nl in num_labels:
        S[off:off + nl, off:off + nl] = 1.0
        off += nl
    return S


# ----------------------------------------------------------------------------
# Full DevignModel readout (everything after the GNN) — single pallas_call
# ----------------------------------------------------------------------------
def devign_forward(outputs, adj_feature, params, *, num_labels, batch_tile=None):
    """outputs: GNN output [B, N, hidden]; adj_feature: [B, N, feature_dim]."""
    num_labels = tuple(int(n) for n in num_labels)
    nl_sum = sum(num_labels)
    B, N, H = outputs.shape
    F = adj_feature.shape[-1]
    C = H + F
    assert N >= 7, "num_node must be >= 7 for conv(3)->pool(3,2)->conv(1)->pool(2,2)"

    Cp = _round_up(C, 128)                       # padded input-channel lanes
    Dp = _round_up(max(H + C, 2 * nl_sum), 128)  # packed Y|Z lane width
    half = Dp // 2
    assert nl_sum <= half and H + C <= Dp

    # Batch tile: default = whole batch (fattest matmul, best for v5e/v6e);
    # pass a smaller divisor of B to split the grid across v7x's 2 TensorCores.
    bt = B if batch_tile is None else int(batch_tile)
    assert B % bt == 0, "batch_tile must divide batch"

    # c_i = concat(outputs, adj_feature), zero-padded to 128 lanes (exact zeros).
    c = jnp.concatenate([outputs.astype(jnp.float32),
                         adj_feature.astype(jnp.float32)], axis=-1)
    c = jnp.pad(c, ((0, 0), (0, 0), (0, Cp - C)))

    w1, b1, w2, b2, hw, hb = _pack_weights(params, H, C, Cp, Dp, half, nl_sum)
    seg = jnp.asarray(_segment_sum_matrix(num_labels, Dp))

    kernel = functools.partial(_devign_readout_kernel, nl_sum=nl_sum, half=half)
    out = pl.pallas_call(
        kernel,
        out_shape=jax.ShapeDtypeStruct((B, 1, Dp), jnp.float32),
        grid=(B // bt,),
        in_specs=[
            pl.BlockSpec((bt, N, Cp), lambda b: (b, 0, 0)),     # activations
            pl.BlockSpec((3 * Cp, Dp), lambda b: (0, 0)),       # packed conv1 W
            pl.BlockSpec((1, Dp), lambda b: (0, 0)),            # packed conv1 b
            pl.BlockSpec((Dp, Dp), lambda b: (0, 0)),           # packed conv2 W
            pl.BlockSpec((1, Dp), lambda b: (0, 0)),            # packed conv2 b
            pl.BlockSpec((Dp, Dp), lambda b: (0, 0)),           # packed head W
            pl.BlockSpec((1, Dp), lambda b: (0, 0)),            # packed head b
            pl.BlockSpec((Dp, Dp), lambda b: (0, 0)),           # segment-sum 0/1
        ],
        out_specs=pl.BlockSpec((bt, 1, Dp), lambda b: (b, 0, 0)),
        compiler_params=pltpu.CompilerParams(
            dimension_semantics=("parallel",),
            vmem_limit_bytes=32 * 1024 * 1024,
        ),
    )(c, w1, b1, w2, b2, hw, hb, seg)

    # Split the lane-packed probabilities into the per-task list (module semantics).
    probs_packed = out[:, 0, :]
    probs, off = [], 0
    for nl in num_labels:
        probs.append(probs_packed[:, off:off + nl])
        off += nl
    return probs


# ----------------------------------------------------------------------------
# Pure-JAX reference (for correctness check)
# ----------------------------------------------------------------------------
def _ref_pipeline(x, w1, b1, w2, b2):
    B, N, C = x.shape
    K1 = w1.shape[0]
    L1 = N - K1 + 1
    y1 = jnp.zeros((B, L1, C), jnp.float32)
    for k in range(K1):
        y1 = y1 + jnp.einsum("bnc,cd->bnd", x[:, k:k + L1, :], w1[k])
    y1 = jax.nn.relu(y1 + b1[None])
    P1 = (L1 - 3) // 2 + 1
    p1 = jnp.stack([jnp.max(y1[:, 2 * t:2 * t + 3, :], axis=1)
                    for t in range(P1)], axis=1)
    y2 = jax.nn.relu(jnp.einsum("bnc,cd->bnd", p1, w2) + b2[None])
    P2 = (P1 - 2) // 2 + 1
    return jnp.stack([jnp.max(y2[:, 2 * t:2 * t + 2, :], axis=1)
                      for t in range(P2)], axis=1)


def _ref_forward(outputs, adj_feature, params):
    c_i = jnp.concatenate([outputs, adj_feature], axis=-1)
    y2 = _ref_pipeline(outputs, params["y_w1"], params["y_b1"],
                       params["y_w2"], params["y_b2"])
    z2 = _ref_pipeline(c_i, params["z_w1"], params["z_b1"],
                       params["z_w2"], params["z_b2"])
    probs = []
    for (wy, by, wz, bz) in params["heads"]:
        ly = jnp.einsum("bpc,cn->bpn", y2, wy) + by
        lz = jnp.einsum("bpc,cn->bpn", z2, wz) + bz
        probs.append(jax.nn.softmax(jnp.mean(ly * lz, axis=1), axis=-1))
    return probs


if __name__ == "__main__":
    # Small shapes consistent with the module's forward.
    B = 4            # batch (split 2x2 over the grid to exercise batch tiling)
    N = 16           # num_node
    HIDDEN = 32      # tune_params['hidden_size']
    FEAT = 16        # args.feature_dim_size
    CONCAT = HIDDEN + FEAT
    NUM_LABELS = (3, 3, 2, 3, 3, 3, 3)

    key = jax.random.PRNGKey(0)
    keys = iter(jax.random.split(key, 64))

    def init(shape, scale=0.1):
        return (scale * jax.random.normal(next(keys), shape)).astype(jnp.float32)

    # Conv weights stored as [K, Cin, Cout] (== transposed PyTorch [Cout, Cin, K]).
    params = {
        "y_w1": init((3, HIDDEN, HIDDEN)), "y_b1": init((1, HIDDEN)),
        "y_w2": init((HIDDEN, HIDDEN)),    "y_b2": init((1, HIDDEN)),
        "z_w1": init((3, CONCAT, CONCAT)), "z_b1": init((1, CONCAT)),
        "z_w2": init((CONCAT, CONCAT)),    "z_b2": init((1, CONCAT)),
        # Linear weights stored as [in, out] (== transposed PyTorch [out, in]).
        "heads": [(init((HIDDEN, nl)), init((1, nl)),
                   init((CONCAT, nl)), init((1, nl))) for nl in NUM_LABELS],
    }

    # GNN output and preprocessed node features (kernel inputs, see TODO above).
    outputs = init((B, N, HIDDEN), scale=1.0)
    adj_feature = init((B, N, FEAT), scale=1.0)

    fwd = jax.jit(functools.partial(devign_forward, num_labels=NUM_LABELS,
                                    batch_tile=2))
    probs = fwd(outputs, adj_feature, params)
    probs = [jax.block_until_ready(p) for p in probs]

    # Correctness check against pure-JAX reference (module is fp64; kernel f32).
    refs = _ref_forward(outputs, adj_feature, params)
    for p, r, nl in zip(probs, refs, NUM_LABELS):
        assert p.shape == (B, nl), p.shape
        np.testing.assert_allclose(np.asarray(p), np.asarray(r),
                                   rtol=2e-4, atol=2e-5)

    print("KERNEL_OK")
</pallas_src>

<mosaic_0001>
module attributes {stable_mosaic.version = 11 : i64} {
  func.func @_devign_readout_kernel(%arg0: i32, %arg1: memref<2x16x128xf32, #tpu.memory_space<vmem>>, %arg2: memref<384x128xf32, #tpu.memory_space<vmem>>, %arg3: memref<1x128xf32, #tpu.memory_space<vmem>>, %arg4: memref<128x128xf32, #tpu.memory_space<vmem>>, %arg5: memref<1x128xf32, #tpu.memory_space<vmem>>, %arg6: memref<128x128xf32, #tpu.memory_space<vmem>>, %arg7: memref<1x128xf32, #tpu.memory_space<vmem>>, %arg8: memref<128x128xf32, #tpu.memory_space<vmem>>, %arg9: memref<2x1x128xf32, #tpu.memory_space<vmem>>) attributes {dimension_semantics = [#tpu.dimension_semantics<parallel>], iteration_bounds = array<i64: 2>, scalar_prefetch = 0 : i64, scratch_operands = 0 : i64, tpu.core_type = #tpu.core_type<tc>, window_params = [{transform_indices = @transform_0, window_bounds = array<i64: 2, 16, 128>}, {pipeline_mode = #tpu.pipeline_mode<synchronous>, transform_indices = @transform_1, window_bounds = array<i64: 384, 128>}, {pipeline_mode = #tpu.pipeline_mode<synchronous>, transform_indices = @transform_2, window_bounds = array<i64: 1, 128>}, {pipeline_mode = #tpu.pipeline_mode<synchronous>, transform_indices = @transform_3, window_bounds = array<i64: 128, 128>}, {pipeline_mode = #tpu.pipeline_mode<synchronous>, transform_indices = @transform_4, window_bounds = array<i64: 1, 128>}, {pipeline_mode = #tpu.pipeline_mode<synchronous>, transform_indices = @transform_5, window_bounds = array<i64: 128, 128>}, {pipeline_mode = #tpu.pipeline_mode<synchronous>, transform_indices = @transform_6, window_bounds = array<i64: 1, 128>}, {pipeline_mode = #tpu.pipeline_mode<synchronous>, transform_indices = @transform_7, window_bounds = array<i64: 128, 128>}, {transform_indices = @transform_8, window_bounds = array<i64: 2, 1, 128>}]} {
    %c0 = arith.constant 0 : index
    %c0_0 = arith.constant 0 : index
    %c0_1 = arith.constant 0 : index
    %0 = vector.load %arg1[%c0, %c0_0, %c0_1] : memref<2x16x128xf32, #tpu.memory_space<vmem>>, vector<2x16x128xf32>
    %1 = vector.extract_strided_slice %0 {offsets = [0, 0, 0], sizes = [2, 14, 128], strides = [1, 1, 1]} : vector<2x16x128xf32> to vector<2x14x128xf32>
    %2 = vector.extract_strided_slice %0 {offsets = [0, 1, 0], sizes = [2, 14, 128], strides = [1, 1, 1]} : vector<2x16x128xf32> to vector<2x14x128xf32>
    %3 = vector.extract_strided_slice %0 {offsets = [0, 2, 0], sizes = [2, 14, 128], strides = [1, 1, 1]} : vector<2x16x128xf32> to vector<2x14x128xf32>
    %4 = tpu.concatenate %1, %2, %3 in 2 : vector<2x14x128xf32>, vector<2x14x128xf32>, vector<2x14x128xf32> -> vector<2x14x384xf32>
    %5 = vector.shape_cast %4 : vector<2x14x384xf32> to vector<28x384xf32>
    %c0_2 = arith.constant 0 : index
    %c0_3 = arith.constant 0 : index
    %6 = vector.load %arg2[%c0_2, %c0_3] : memref<384x128xf32, #tpu.memory_space<vmem>>, vector<384x128xf32>
    %cst = arith.constant dense<0.000000e+00> : vector<28x128xf32>
    %7 = tpu.matmul %5, %6, %cst {dimension_numbers = #tpu.dot_dimension_numbers<[1], [0], [0], [1], [0, 0, 1, 1], [], []>} : vector<28x384xf32>, vector<384x128xf32>, vector<28x128xf32> -> vector<28x128xf32>
    %8 = vector.shape_cast %7 : vector<28x128xf32> to vector<2x14x128xf32>
    %c0_4 = arith.constant 0 : index
    %c0_5 = arith.constant 0 : index
    %9 = vector.load %arg3[%c0_4, %c0_5] : memref<1x128xf32, #tpu.memory_space<vmem>>, vector<1x128xf32>
    %10 = vector.shape_cast %9 : vector<1x128xf32> to vector<1x1x128xf32>
    %11 = vector.broadcast %10 : vector<1x1x128xf32> to vector<2x14x128xf32>
    %12 = arith.addf %8, %11 : vector<2x14x128xf32>
    %cst_6 = arith.constant 0.000000e+00 : f32
    %13 = vector.broadcast %cst_6 : f32 to vector<2x14x128xf32>
    %14 = arith.maximumf %12, %13 : vector<2x14x128xf32>
    %15 = vector.extract_strided_slice %14 {offsets = [0, 0, 0], sizes = [2, 12, 128], strides = [1, 1, 1]} : vector<2x14x128xf32> to vector<2x12x128xf32>
    %16 = vector.extract_strided_slice %14 {offsets = [0, 1, 0], sizes = [2, 12, 128], strides = [1, 1, 1]} : vector<2x14x128xf32> to vector<2x12x128xf32>
    %17 = arith.maximumf %15, %16 : vector<2x12x128xf32>
    %18 = vector.extract_strided_slice %14 {offsets = [0, 2, 0], sizes = [2, 12, 128], strides = [1, 1, 1]} : vector<2x14x128xf32> to vector<2x12x128xf32>
    %19 = arith.maximumf %17, %18 : vector<2x12x128xf32>
    %20 = vector.shape_cast %19 : vector<2x12x128xf32> to vector<2x6x2x128xf32>
    %21 = vector.extract_strided_slice %20 {offsets = [0, 0, 0, 0], sizes = [2, 6, 1, 128], strides = [1, 1, 1, 1]} : vector<2x6x2x128xf32> to vector<2x6x1x128xf32>
    %22 = vector.shape_cast %21 : vector<2x6x1x128xf32> to vector<2x6x128xf32>
    %23 = vector.shape_cast %22 : vector<2x6x128xf32> to vector<12x128xf32>
    %c0_7 = arith.constant 0 : index
    %c0_8 = arith.constant 0 : index
    %24 = vector.load %arg4[%c0_7, %c0_8] : memref<128x128xf32, #tpu.memory_space<vmem>>, vector<128x128xf32>
    %cst_9 = arith.constant dense<0.000000e+00> : vector<12x128xf32>
    %25 = tpu.matmul %23, %24, %cst_9 {dimension_numbers = #tpu.dot_dimension_numbers<[1], [0], [0], [1], [0, 0, 1, 1], [], []>} : vector<12x128xf32>, vector<128x128xf32>, vector<12x128xf32> -> vector<12x128xf32>
    %26 = vector.shape_cast %25 : vector<12x128xf32> to vector<2x6x128xf32>
    %c0_10 = arith.constant 0 : index
    %c0_11 = arith.constant 0 : index
    %27 = vector.load %arg5[%c0_10, %c0_11] : memref<1x128xf32, #tpu.memory_space<vmem>>, vector<1x128xf32>
    %28 = vector.shape_cast %27 : vector<1x128xf32> to vector<1x1x128xf32>
    %29 = vector.broadcast %28 : vector<1x1x128xf32> to vector<2x6x128xf32>
    %30 = arith.addf %26, %29 : vector<2x6x128xf32>
    %cst_12 = arith.constant 0.000000e+00 : f32
    %31 = vector.broadcast %cst_12 : f32 to vector<2x6x128xf32>
    %32 = arith.maximumf %30, %31 : vector<2x6x128xf32>
    %33 = vector.shape_cast %32 : vector<2x6x128xf32> to vector<2x3x2x128xf32>
    %cst_13 = arith.constant dense<0xFF800000> : vector<2x3x128xf32>
    %34 = vector.multi_reduction <maximumf>, %33, %cst_13 [2] : vector<2x3x2x128xf32> to vector<2x3x128xf32>
    %35 = vector.shape_cast %34 : vector<2x3x128xf32> to vector<6x128xf32>
    %c0_14 = arith.constant 0 : index
    %c0_15 = arith.constant 0 : index
    %36 = vector.load %arg6[%c0_14, %c0_15] : memref<128x128xf32, #tpu.memory_space<vmem>>, vector<128x128xf32>
    %cst_16 = arith.constant dense<0.000000e+00> : vector<6x128xf32>
    %37 = tpu.matmul %35, %36, %cst_16 {dimension_numbers = #tpu.dot_dimension_numbers<[1], [0], [0], [1], [0, 0, 1, 1], [], []>} : vector<6x128xf32>, vector<128x128xf32>, vector<6x128xf32> -> vector<6x128xf32>
    %c0_17 = arith.constant 0 : index
    %c0_18 = arith.constant 0 : index
    %38 = vector.load %arg7[%c0_17, %c0_18] : memref<1x128xf32, #tpu.memory_space<vmem>>, vector<1x128xf32>
    %39 = vector.broadcast %38 : vector<1x128xf32> to vector<6x128xf32>
    %40 = arith.addf %37, %39 : vector<6x128xf32>
    %c64_i32 = arith.constant 64 : i32
    %41 = tpu.dynamic_rotate %40 by %c64_i32 dim 1 : vector<6x128xf32>, i32 -> vector<6x128xf32>
    %42 = arith.mulf %40, %41 : vector<6x128xf32>
    %43 = vector.shape_cast %42 : vector<6x128xf32> to vector<2x3x128xf32>
    %cst_19 = arith.constant dense<0.000000e+00> : vector<2x128xf32>
    %44 = vector.multi_reduction <add>, %43, %cst_19 [1] : vector<2x3x128xf32> to vector<2x128xf32>
    %cst_20 = arith.constant 0.333333343 : f32
    %45 = vector.broadcast %cst_20 : f32 to vector<2x128xf32>
    %46 = arith.mulf %44, %45 : vector<2x128xf32>
    %47 = tpu.iota {dimensions = array<i32: 1>} : vector<1x128xi32>
    %c20_i32 = arith.constant 20 : i32
    %48 = vector.broadcast %c20_i32 : i32 to vector<1x128xi32>
    %49 = arith.cmpi slt, %47, %48 : vector<1x128xi32>
    %cst_21 = arith.constant 0.000000e+00 : f32
    %cst_22 = arith.constant -1.000000e+30 : f32
    %50 = vector.broadcast %cst_21 : f32 to vector<1x128xf32>
    %51 = vector.broadcast %cst_22 : f32 to vector<1x128xf32>
    %52 = arith.select %49, %50, %51 : vector<1x128xi1>, vector<1x128xf32>
    %cst_23 = arith.constant 0.000000e+00 : f32
    %cst_24 = arith.constant 1.000000e+00 : f32
    %53 = vector.broadcast %cst_23 : f32 to vector<1x128xf32>
    %54 = vector.broadcast %cst_24 : f32 to vector<1x128xf32>
    %55 = arith.select %49, %53, %54 : vector<1x128xi1>, vector<1x128xf32>
    %56 = vector.broadcast %52 : vector<1x128xf32> to vector<2x128xf32>
    %57 = arith.addf %46, %56 : vector<2x128xf32>
    %cst_25 = arith.constant dense<0xFF800000> : vector<2xf32>
    %58 = vector.multi_reduction <maximumf>, %57, %cst_25 [1] : vector<2x128xf32> to vector<2xf32>
    %59 = vector.shape_cast %58 : vector<2xf32> to vector<2x1xf32>
    %60 = vector.broadcast %59 : vector<2x1xf32> to vector<2x128xf32>
    %61 = arith.subf %46, %60 : vector<2x128xf32>
    %62 = vector.broadcast %52 : vector<1x128xf32> to vector<2x128xf32>
    %63 = arith.addf %61, %62 : vector<2x128xf32>
    %64 = math.exp %63 : vector<2x128xf32>
    %c0_26 = arith.constant 0 : index
    %c0_27 = arith.constant 0 : index
    %65 = vector.load %arg8[%c0_26, %c0_27] : memref<128x128xf32, #tpu.memory_space<vmem>>, vector<128x128xf32>
    %cst_28 = arith.constant dense<0.000000e+00> : vector<2x128xf32>
    %66 = tpu.matmul %64, %65, %cst_28 {dimension_numbers = #tpu.dot_dimension_numbers<[1], [0], [0], [1], [0, 0, 1, 1], [], []>} : vector<2x128xf32>, vector<128x128xf32>, vector<2x128xf32> -> vector<2x128xf32>
    %67 = vector.broadcast %55 : vector<1x128xf32> to vector<2x128xf32>
    %68 = arith.addf %66, %67 : vector<2x128xf32>
    %69 = tpu.reciprocal %68 {approx = true} : vector<2x128xf32> -> vector<2x128xf32>
    %70 = arith.mulf %68, %69 : vector<2x128xf32>
    %cst_29 = arith.constant 2.000000e+00 : f32
    %71 = vector.broadcast %cst_29 : f32 to vector<2x128xf32>
    %72 = arith.subf %71, %70 : vector<2x128xf32>
    %73 = arith.mulf %69, %72 : vector<2x128xf32>
    %74 = arith.mulf %64, %73 : vector<2x128xf32>
    %75 = vector.shape_cast %74 : vector<2x128xf32> to vector<2x1x128xf32>
    %c0_30 = arith.constant 0 : index
    %c0_31 = arith.constant 0 : index
    %c0_32 = arith.constant 0 : index
    %76 = vector.load %arg9[%c0_30, %c0_31, %c0_32] : memref<2x1x128xf32, #tpu.memory_space<vmem>>, vector<2x1x128xf32>
    tpu.vector_store %arg9[%c0_30, %c0_31, %c0_32], %75 {strides = array<i32>} : memref<2x1x128xf32, #tpu.memory_space<vmem>>, vector<2x1x128xf32>,
    return
  }
  func.func @transform_0(%arg0: i32) -> (i32, i32, i32) {
    %c0_i32 = arith.constant 0 : i32
    %c0_i32_0 = arith.constant 0 : i32
    %c0_i32_1 = arith.constant 0 : i32
    return %arg0, %c0_i32, %c0_i32_0 : i32, i32, i32
  }
  func.func @transform_1(%arg0: i32) -> (i32, i32) {
    %c0_i32 = arith.constant 0 : i32
    %c0_i32_0 = arith.constant 0 : i32
    %c0_i32_1 = arith.constant 0 : i32
    return %c0_i32, %c0_i32_0 : i32, i32
  }
  func.func @transform_2(%arg0: i32) -> (i32, i32) {
    %c0_i32 = arith.constant 0 : i32
    %c0_i32_0 = arith.constant 0 : i32
    %c0_i32_1 = arith.constant 0 : i32
    return %c0_i32, %c0_i32_0 : i32, i32
  }
  func.func @transform_3(%arg0: i32) -> (i32, i32) {
    %c0_i32 = arith.constant 0 : i32
    %c0_i32_0 = arith.constant 0 : i32
    %c0_i32_1 = arith.constant 0 : i32
    return %c0_i32, %c0_i32_0 : i32, i32
  }
  func.func @transform_4(%arg0: i32) -> (i32, i32) {
    %c0_i32 = arith.constant 0 : i32
    %c0_i32_0 = arith.constant 0 : i32
    %c0_i32_1 = arith.constant 0 : i32
    return %c0_i32, %c0_i32_0 : i32, i32
  }
  func.func @transform_5(%arg0: i32) -> (i32, i32) {
    %c0_i32 = arith.constant 0 : i32
    %c0_i32_0 = arith.constant 0 : i32
    %c0_i32_1 = arith.constant 0 : i32
    return %c0_i32, %c0_i32_0 : i32, i32
  }
  func.func @transform_6(%arg0: i32) -> (i32, i32) {
    %c0_i32 = arith.constant 0 : i32
    %c0_i32_0 = arith.constant 0 : i32
    %c0_i32_1 = arith.constant 0 : i32
    return %c0_i32, %c0_i32_0 : i32, i32
  }
  func.func @transform_7(%arg0: i32) -> (i32, i32) {
    %c0_i32 = arith.constant 0 : i32
    %c0_i32_0 = arith.constant 0 : i32
    %c0_i32_1 = arith.constant 0 : i32
    return %c0_i32, %c0_i32_0 : i32, i32
  }
  func.func @transform_8(%arg0: i32) -> (i32, i32, i32) {
    %c0_i32 = arith.constant 0 : i32
    %c0_i32_0 = arith.constant 0 : i32
    %c0_i32_1 = arith.constant 0 : i32
    return %arg0, %c0_i32, %c0_i32_0 : i32, i32, i32
  }
}

</mosaic_0001>

<bundles_post_ra>
// kernel: devign_forward.1
= control target key start
LH: loop header
LB: loop body
LE: loop exit
PB: predicated region body
PF: predicated region fallthrough
CT: control target
= control target key end

     0   :  { %s2241_s27 = smov 0   ;;  %s2859_s0 = inlined_call_operand.vmem [shape: f32[4,16,128], index: 0, kind: input, shape index: {}]   ;;  %s2860_s1 = inlined_call_operand.vmem [shape: f32[384,128], index: 1, kind: input, shape index: {}]   ;;  %s2861_s2 = inlined_call_operand.vmem [shape: f32[1,128], index: 2, kind: input, shape index: {}]   ;;  %s2862_s3 = inlined_call_operand.vmem [shape: f32[128,128], index: 3, kind: input, shape index: {}]   ;;  %s2863_s4 = inlined_call_operand.vmem [shape: f32[1,128], index: 4, kind: input, shape index: {}]   ;;  %s2864_s5 = inlined_call_operand.vmem [shape: f32[128,128], index: 5, kind: input, shape index: {}]   ;;  %s2865_s6 = inlined_call_operand.vmem [shape: f32[1,128], index: 6, kind: input, shape index: {}]   ;;  %s2866_s7 = inlined_call_operand.vmem [shape: f32[128,128], index: 7, kind: input, shape index: {}]   ;;  %s2867_s8 = inlined_call_operand.vmem [shape: f32[4,1,128], index: 8, kind: output, shape index: {}]  }
   0x1 LB: > { %s1730_s28 = sadd.s32 4294967295, %s2186_s27   ;;  %p1734_p0 = scmp.ge.s32.totalorder %s2186_s27, 1  ;;  %s2186_s27 = sphi %s2241_s27, %s18_s27  }
   0x2   : > { %p264_p1 = scmp.lt.s32.totalorder %s2186_s27, 3 }
   0x4   : > { %p265_p2 = pnand %p1734_p0, %p264_p1 }
   0x5   : > { %v486_v0 = vld [vmem:[%s2860_s1 + $0x80] sm:$0xff] (!%p265_p2)  ;;  %v487_v1 = vld [vmem:[%s2860_s1 + $0x88] sm:$0xff] (!%p265_p2)  ;;  %s2258_s13 = sshll.u32 (!%p265_p2), %s1730_s28, 1  ;;  %v488_v9 = vld [vmem:[%s2860_s1 + $0x90] sm:$0xff] (!%p265_p2)  ;;  %v2188_v28 = vmov (!%p265_p2), 1983009808   ;;  %v338_v30 = vlaneseq (!%p265_p2) }
   0x6   : > { %268 = sbr.rel (%p265_p2) target bundleno = 1306 (0x51a), region = 52  ;;  %v470_v2 = vld [vmem:[%s2860_s1] sm:$0xff] (!%p265_p2)  ;;  %v2014_v3 = vpack.c.bf16 (!%p265_p2), %v487_v1, %v486_v0  ;;  %v471_v4 = vld [vmem:[%s2860_s1 + $0x8] sm:$0xff] (!%p265_p2)  ;;  %v489_v10 = vld [vmem:[%s2860_s1 + $0x98] sm:$0xff] (!%p265_p2)  ;;  %p299_p3 = scmp.lt.s32.totalorder (!%p265_p2), %s2258_s13, 3  ;;  %v336_v29 = vunpack.c.l.s4 (!%p265_p2), %v2188_v28  ;;  %vm318_vm0 = vcmask (!%p265_p2), 1046528  }
   0x7   : > { %v502_v5 = vld [vmem:[%s2860_s1 + $0x100] sm:$0xff] (!%p265_p2)  ;;  %v503_v6 = vld [vmem:[%s2860_s1 + $0x108] sm:$0xff] (!%p265_p2)  ;;  %v2016_v7 = vpack.c.bf16 (!%p265_p2), %v471_v4, %v470_v2  ;;  %v472_v11 = vld [vmem:[%s2860_s1 + $0x10] sm:$0xff] (!%p265_p2)  ;;  %v2018_v12 = vpack.c.bf16 (!%p265_p2), %v489_v10, %v488_v9  ;;  %v2368_v48 = vshrl.u32 (!%p265_p2), %v338_v30, 7  ;;  %vm325_vm1 = vcmask (!%p265_p2), 1045504   ;;  %s2192_s19 = smov (!%p265_p2), 64  }
   0x8   : > { %v2046_v8 = vpack.c.bf16 (!%p265_p2), %v503_v6, %v502_v5  ;;  %2015 = vmatprep.subr.bf16.mxu0 (!%p265_p2), %v2014_v3  ;;  %v473_v13 = vld [vmem:[%s2860_s1 + $0x18] sm:$0xff] (!%p265_p2)  ;;  %v504_v14 = vld [vmem:[%s2860_s1 + $0x110] sm:$0xff] (!%p265_p2)  ;;  %v490_v18 = vld [vmem:[%s2860_s1 + $0xa0] sm:$0xff] (!%p265_p2)  ;;  %v337_v47 = vunpack.c.0.s8 (!%p265_p2), %v336_v29  ;;  %vm968_vm2 = vcmask (!%p265_p2), 1040384   ;;  %vm969_vm3 = vcmask (!%p265_p2), 1042434  }
   0x9   : > { %v505_v15 = vld [vmem:[%s2860_s1 + $0x118] sm:$0xff] (!%p265_p2)  ;;  %2017 = vmatpush3.bf16.msra.mxu0 (!%p265_p2), %v2016_v7  ;;  %v2020_v16 = vpack.c.bf16 (!%p265_p2), %v473_v13, %v472_v11  ;;  %v491_v19 = vld [vmem:[%s2860_s1 + $0xa8] sm:$0xff] (!%p265_p2)  ;;  %v474_v20 = vld [vmem:[%s2860_s1 + $0x20] sm:$0xff] (!%p265_p2)  ;;  %vm971_vm4 = vcmask (!%p265_p2), 1044484   ;;  %vm973_vm5 = vcmask (!%p265_p2), 1046534   ;;  %vm1125_vm9 = vcmask (!%p265_p2), 1041409  }
   0xa   : > { %2047 = vmatprep.subr.bf16.mxu1 (!%p265_p2), %v2046_v8  ;;  %v2050_v17 = vpack.c.bf16 (!%p265_p2), %v505_v15, %v504_v14  ;;  %2019 = vmatprep.subr.bf16.mxu0 (!%p265_p2), %v2018_v12  ;;  %v2022_v21 = vpack.c.bf16 (!%p265_p2), %v491_v19, %v490_v18  ;;  %v475_v22 = vld [vmem:[%s2860_s1 + $0x28] sm:$0xff] (!%p265_p2)  ;;  %v506_v23 = vld [vmem:[%s2860_s1 + $0x120] sm:$0xff] (!%p265_p2)  ;;  %v492_v26 = vld [vmem:[%s2860_s1 + $0xb0] sm:$0xff] (!%p265_p2)  ;;  %v2428_v1 = vsub.s32 (!%p265_p2), %v337_v47, %v2368_v48  ;;  %vm1128_vm10 = vcmask (!%p265_p2), 1043459  }
   0xb   : > { %2049 = vmatpush3.bf16.msra.mxu1 (!%p265_p2), %v2046_v8  ;;  %v507_v24 = vld [vmem:[%s2860_s1 + $0x128] sm:$0xff] (!%p265_p2)  ;;  %v493_v27 = vld [vmem:[%s2860_s1 + $0xb8] sm:$0xff] (!%p265_p2)  ;;  %v476_v31 = vld [vmem:[%s2860_s1 + $0x30] sm:$0xff] (!%p265_p2)  ;;  %v2024_v34 = vpack.c.bf16 (!%p265_p2), %v475_v22, %v474_v20  ;;  %vm1131_vm11 = vcmask (!%p265_p2), 1045509   ;;  %vm1134_vm12 = vcmask (!%p265_p2), 1047559   ;;  %vm2190_vm13 = vmmov (!%p265_p2), 0  }
   0xc   : > { %2051 = vmatprep.subr.bf16.mxu1 (!%p265_p2), %v2050_v17  ;;  %v2054_v25 = vpack.c.bf16 (!%p265_p2), %v507_v24, %v506_v23  ;;  %v508_v32 = vld [vmem:[%s2860_s1 + $0x130] sm:$0xff] (!%p265_p2)  ;;  %v509_v33 = vld [vmem:[%s2860_s1 + $0x138] sm:$0xff] (!%p265_p2)  ;;  %v494_v36 = vld [vmem:[%s2860_s1 + $0xc0] sm:$0xff] (!%p265_p2)  ;;  %v2026_v38 = vpack.c.bf16 (!%p265_p2), %v493_v27, %v492_v26  ;;  %vm1286_vm14 = vcmask (!%p265_p2), 1041408   ;;  %vm1533_vm15 = vcmask (!%p265_p2), 1042432  }
   0xd   : > { %s2871_s13 = smov (!%p299_p3, %s2258_s13), 3  ;;  %2021 = vmatpush3.bf16.msra.mxu0 %v2020_v16  ;;  %v477_v35 = vld [vmem:[%s2860_s1 + $0x38] sm:$0xff]  ;;  %v495_v37 = vld [vmem:[%s2860_s1 + $0xc8] sm:$0xff]  ;;  %v2338_v39 = vld [vmem:[%s2860_s1 + $0x40] sm:$0xff]  ;;  %v2058_v43 = vpack.c.bf16 %v509_v33, %v508_v32 }
   0xe   : > { %2023 = vmatprep.subr.bf16.mxu0 %v2022_v21  ;;  %v2343_v40 = vld [vmem:[%s2860_s1 + $0x48] sm:$0xff]  ;;  %v510_v41 = vld [vmem:[%s2860_s1 + $0x140] sm:$0xff]  ;;  %v2354_v44 = vld [vmem:[%s2860_s1 + $0xd0] sm:$0xff]  ;;  %s1754_s14 = sshll.u32 %s2871_s13, 4  ;;  %v2028_v52 = vpack.c.bf16 %v477_v35, %v476_v31  ;;  %v2030_v56 = vpack.c.bf16 %v495_v37, %v494_v36  ;;  %s308_s12 = scalar_lea.vmem %s2867_s8, %s2871_s13 }
   0xf   : > { %2053 = vmatpush3.bf16.msra.mxu1 %v2050_v17  ;;  %v511_v42 = vld [vmem:[%s2860_s1 + $0x148] sm:$0xff]  ;;  %v2359_v45 = vld [vmem:[%s2860_s1 + $0xd8] sm:$0xff]  ;;  %v2364_v46 = vld [vmem:[%s2860_s1 + $0x50] sm:$0xff]  ;;  %s303_s16 = scalar_lea.vmem %s2859_s0, %s1754_s14  ;;  %v2032_v60 = vpack.c.bf16 %v2343_v40, %v2338_v39 }
  0x10   : > { %2055 = vmatprep.subr.bf16.mxu1 %v2054_v25  ;;  %v2373_v49 = vld [vmem:[%s2860_s1 + $0x58] sm:$0xff]  ;;  %v512_v50 = vld [vmem:[%s2860_s1 + $0x150] sm:$0xff]  ;;  %v2384_v53 = vld [vmem:[%s2860_s1 + $0xe0] sm:$0xff]  ;;  %v2062_v61 = vpack.c.bf16 %v511_v42, %v510_v41  ;;  %v2034_v2 = vpack.c.bf16 %v2359_v45, %v2354_v44 }
  0x11   : > { %v513_v51 = vld [vmem:[%s2860_s1 + $0x158] sm:$0xff]  ;;  %2025 = vmatpush3.bf16.msra.mxu0 %v2024_v34  ;;  %v2389_v54 = vld [vmem:[%s2860_s1 + $0xe8] sm:$0xff]  ;;  %v2394_v55 = vld [vmem:[%s2860_s1 + $0x60] sm:$0xff]  ;;  %v2036_v3 = vpack.c.bf16 %v2373_v49, %v2364_v46 }
  0x12   : > { %2027 = vmatprep.subr.bf16.mxu0 %v2026_v38  ;;  %v2399_v57 = vld [vmem:[%s2860_s1 + $0x68] sm:$0xff]  ;;  %v514_v58 = vld [vmem:[%s2860_s1 + $0x160] sm:$0xff]  ;;  %v2415_v62 = vld [vmem:[%s2860_s1 + $0xf0] sm:$0xff]  ;;  %v2066_v4 = vpack.c.bf16 %v513_v51, %v512_v50  ;;  %v2038_v5 = vpack.c.bf16 %v2389_v54, %v2384_v53 }
  0x13   : > { %2057 = vmatpush3.bf16.msra.mxu1 %v2054_v25  ;;  %v515_v59 = vld [vmem:[%s2860_s1 + $0x168] sm:$0xff]  ;;  %v2420_v63 = vld [vmem:[%s2860_s1 + $0xf8] sm:$0xff]  ;;  %v2425_v0 = vld [vmem:[%s2860_s1 + $0x70] sm:$0xff]  ;;  %v2040_v9 = vpack.c.bf16 %v2399_v57, %v2394_v55 }
  0x14   : > { %2059 = vmatprep.subr.bf16.mxu1 %v2058_v43  ;;  %v2439_v6 = vld [vmem:[%s2860_s1 + $0x78] sm:$0xff]  ;;  %v516_v7 = vld [vmem:[%s2860_s1 + $0x170] sm:$0xff]  ;;  %v2449_v10 = vpack.c.bf16 %v515_v59, %v514_v58  ;;  %v2042_v11 = vpack.c.bf16 %v2420_v63, %v2415_v62  ;;  %v310_v13 = vld [vmem:[%s303_s16] sm:$0xff] }
  0x15   : > { %v517_v8 = vld [vmem:[%s2860_s1 + $0x178] sm:$0xff]  ;;  %2029 = vmatpush3.bf16.msra.mxu0 %v2028_v52  ;;  %v2044_v12 = vpack.c.bf16 %v2439_v6, %v2425_v0  ;;  %v311_v14 = vld [vmem:[%s303_s16 + $0x8] sm:$0xff]  ;;  %v2455_v15 = vld [vmem:[%s303_s16 + $0x10] sm:$0xff]  ;;  %v319_v17 = vrot.slane %v310_v13, 1  ;;  %v326_v20 = vrot.slane %v310_v13, 2 }
  0x16   : > { %2031 = vmatprep.subr.bf16.mxu0 %v2030_v56  ;;  %v2457_v16 = vld [vmem:[%s303_s16 + $0x18] sm:$0xff]  ;;  %v320_v18 = vrot.slane %v311_v14, 1  ;;  %v322_v19 = vrot.slane %v2455_v15, 1  ;;  %v327_v22 = vrot.slane %v311_v14, 2  ;;  %v329_v23 = vrot.slane %v2455_v15, 2  ;;  %vm970_vm6 = vmor %vm968_vm2, %vm969_vm3 }
  0x17   : > { %2061 = vmatpush3.bf16.msra.mxu1 %v2058_v43  ;;  %v2461_v21 = vrot.slane %v2457_v16, 1  ;;  %v2465_v24 = vrot.slane %v2457_v16, 2  ;;  %v2467_v25 = vpack.c.bf16 %v517_v8, %v516_v7  ;;  %vm972_vm7 = vmor %vm970_vm6, %vm971_vm4 }
  0x18   : > { %2063 = vmatprep.subr.bf16.mxu1 %v2062_v61  ;;  %v321_v26 = vsel %vm318_vm0, %v319_v17, %v320_v18  ;;  %v367_v27 = vcombine.low %v311_v14, %v320_v18  ;;  %v368_v28 = vcombine.high %v311_v14, %v320_v18  ;;  %v328_v33 = vsel %vm325_vm1, %v326_v20, %v327_v22  ;;  %vm2638_vm8 = vmor %vm972_vm7, %vm973_vm5 }
  0x19   : > { %2033 = vmatpush3.bf16.msra.mxu0 %v2032_v60  ;;  %v324_v29 = vsel %vm318_vm0, %v322_v19, %v2461_v21  ;;  %v332_v31 = vcombine.low %v310_v13, %v321_v26  ;;  %v333_v32 = vcombine.high %v310_v13, %v321_v26  ;;  %v331_v35 = vsel %vm325_vm1, %v329_v23, %v2465_v24 }
  0x1a   : > { %2035 = vmatprep.subr.bf16.mxu0 %v2034_v2  ;;  %v402_v34 = vcombine.high %v2455_v15, %v324_v29  ;;  %v334_v36 = vcombine.high %v328_v33, %v328_v33  ;;  %v355_v39 = vrot.slane %v328_v33, %v2428_v1  ;;  %v403_v40 = vcombine.high %v331_v35, %v331_v35 }
  0x1b   : > { %2065 = vmatpush3.bf16.msra.mxu1 %v2062_v61  ;;  %v341_v37 = vrot.slane %v332_v31, %v2428_v1  ;;  %v348_v38 = vrot.slane %v333_v32, %v2428_v1  ;;  %v424_v42 = vrot.slane %v331_v35, %v2428_v1  ;;  %v369_v43 = vcombine.high %v327_v22, %v327_v22 }
  0x1c   : > { %2067 = vmatprep.subr.bf16.mxu1 %v2066_v4  ;;  %v362_v41 = vrot.slane %v334_v36, %v2428_v1  ;;  %v390_v44 = vrot.slane %v327_v22, %v2428_v1  ;;  %v431_v47 = vrot.slane %v403_v40, %v2428_v1  ;;  %v535_v49 = vrot.slane %v355_v39, %v2428_v1  ;;  %v1049_v36 = vld [vmem:[%s2862_s3] sm:$0xff]  ;;  %v1051_v39 = vld [vmem:[%s2862_s3 + $0x10] sm:$0xff]  ;;  %v1052_v40 = vld [vmem:[%s2862_s3 + $0x18] sm:$0xff] }
  0x1d   : > { %2037 = vmatpush3.bf16.msra.mxu0 %v2036_v3  ;;  %v528_v45 = vrot.slane %v341_v37, %v2428_v1  ;;  %v542_v46 = vrot.slane %v348_v38, %v2428_v1  ;;  %v397_v51 = vrot.slane %v369_v43, %v2428_v1  ;;  %v376_v55 = vrot.slane %v367_v27, %v2428_v1  ;;  %v1050_v37 = vld [vmem:[%s2862_s3 + $0x8] sm:$0xff] }
  0x1e   : > { %2039 = vmatprep.subr.bf16.mxu0 %v2038_v5  ;;  %v549_v50 = vrot.slane %v362_v41, %v2428_v1  ;;  %v570_v52 = vrot.slane %v390_v44, %v2428_v1  ;;  %v383_v56 = vrot.slane %v368_v28, %v2428_v1  ;;  %v401_v59 = vcombine.low %v2455_v15, %v324_v29  ;;  %v1054_v43 = vld [vmem:[%s2862_s3 + $0x28] sm:$0xff] }
  0x1f   : > { %2069 = vmatpush3.bf16.msra.mxu1 %v2066_v4  ;;  %v551_v53 = vcombine.high %v528_v45, %v542_v46  ;;  %v550_v54 = vcombine.low %v528_v45, %v542_v46  ;;  %v1740_v58 = vcombine.low %v397_v51, %v424_v42  ;;  %v417_v60 = vrot.slane %v402_v34, %v2428_v1  ;;  %v1055_v45 = vld [vmem:[%s2862_s3 + $0x30] sm:$0xff]  ;;  %v1056_v46 = vld [vmem:[%s2862_s3 + $0x38] sm:$0xff] }
  0x20   : > { %2071 = vmatprep.subr.bf16.mxu1 %v2449_v10  ;;  %v552_v57 = vcombine.low %v535_v49, %v549_v50  ;;  %v563_v61 = vrot.slane %v376_v55, %v2428_v1  ;;  %v436_v2 = vcombine.low %v2457_v16, %v2461_v21  ;;  %v459_v3 = vrot.slane %v2465_v24, %v2428_v1  ;;  %v1057_v49 = vld [vmem:[%s2862_s3 + $0x40] sm:$0xff]  ;;  %v1058_v50 = vld [vmem:[%s2862_s3 + $0x48] sm:$0xff] }
  0x21   : > { %2041 = vmatpush3.bf16.msra.mxu0 %v2040_v9  ;;  %716 = vmatprep.mubr.f32.mxu0 %v551_v53  ;;  %v584_v4 = vrot.slane %v1740_v58, %v2428_v1  ;;  %v410_v5 = vrot.slane %v401_v59, %v2428_v1  ;;  %v435_v7 = vcombine.high %v417_v60, %v431_v47  ;;  %v1060_v53 = vld [vmem:[%s2862_s3 + $0x58] sm:$0xff]  ;;  %v1061_v55 = vld [vmem:[%s2862_s3 + $0x60] sm:$0xff]  ;;  %v1063_v58 = vld [vmem:[%s2862_s3 + $0x70] sm:$0xff] }
  0x22   : > { %2043 = vmatprep.subr.bf16.mxu0 %v2042_v11  ;;  %1903 = vmatprep.mubr.f32.mxu1 %v552_v57  ;;  %v445_v8 = vrot.slane %v436_v2, %v2428_v1  ;;  %v434_v9 = vcombine.low %v417_v60, %v431_v47  ;;  %v437_v13 = vcombine.high %v2457_v16, %v2461_v21  ;;  %v1064_v59 = vld [vmem:[%s2862_s3 + $0x78] sm:$0xff]  ;;  %v1330_v2 = vld [vmem:[%s2864_s5 + $0x8] sm:$0xff] }
  0x23   : > { %2073 = vmatpush3.bf16.msra.mxu1 %v2449_v10  ;;  %v587_v14 = vcombine.low %v570_v52, %v584_v4  ;;  %v1739_v10 = vcombine.low %v383_v56, %v410_v5  ;;  %v433_v15 = vcombine.high %v410_v5, %v424_v42  ;;  %v438_v62 = vcombine.high %v2465_v24, %v2465_v24  ;;  %v1059_v52 = vld [vmem:[%s2862_s3 + $0x50] sm:$0xff]  ;;  %v1062_v56 = vld [vmem:[%s2862_s3 + $0x68] sm:$0xff]  ;;  %v1747_v5 = vld [vmem:[%s2861_s2] ss:$0 sm:$0xff] }
  0x24   : > { %2075 = vmatprep.subr.bf16.mxu1 %v2467_v25  ;;  %v1743_v63 = vcombine.low %v435_v7, %v445_v8  ;;  %v467_v11 = vcombine.low %v445_v8, %v459_v3  ;;  %v1742_v17 = vcombine.high %v424_v42, %v434_v9  ;;  %v452_v18 = vrot.slane %v437_v13, %v2428_v1  ;;  %v1053_v42 = vld [vmem:[%s2862_s3 + $0x20] sm:$0xff] }
  0x25   : > { %2045 = vmatpush3.bf16.msra.mxu0 %v2044_v12  ;;  %v577_v19 = vrot.slane %v1739_v10, %v2428_v1  ;;  %v1741_v16 = vcombine.low %v433_v15, %v417_v60  ;;  %v466_v20 = vrot.slane %v438_v62, %v2428_v1  ;;  %v468_v21 = vcombine.high %v445_v8, %v459_v3 }
  0x26   : > { %v612_v22 = vrot.slane %v1743_v63, %v2428_v1  ;;  %v1744_v23 = vcombine.high %v431_v47, %v467_v11  ;;  %v605_v24 = vrot.slane %v1742_v17, %v2428_v1  ;;  %v2078_v38 = vpack.c.bf16 %v1050_v37, %v1049_v36 }
  0x27   : > { %2077 = vmatpush3.bf16.msra.mxu1 %v2467_v25  ;;  %v586_v0 = vcombine.high %v563_v61, %v577_v19  ;;  %v585_v6 = vcombine.low %v563_v61, %v577_v19  ;;  %v598_v12 = vrot.slane %v1741_v16, %v2428_v1  ;;  %v469_v26 = vcombine.low %v452_v18, %v466_v20  ;;  %v1329_v61 = vld [vmem:[%s2864_s5] sm:$0xff] }
  0x28   : > { %717 = vmatmul.mubr.f32.vlgmr.msra.gmra.mrb[0].mxu0 %v550_v54  ;;  %v619_v25 = vrot.slane %v1744_v23, %v2428_v1  ;;  %v1745_v27 = vcombine.low %v468_v21, %v452_v18  ;;  %2079 = vmatprep.subr.bf16.mxu0 %v2078_v38  ;;  %v2082_v41 = vpack.c.bf16 %v1052_v40, %v1051_v39 }
  0x29   : > { %721 = vmatprep.mubr.f32.mxu0 %v586_v0  ;;  %v621_v28 = vcombine.high %v598_v12, %v612_v22  ;;  %v1746_v29 = vcombine.high %v459_v3, %v469_v26  ;;  %v620_v33 = vcombine.low %v598_v12, %v612_v22  ;;  %2081 = vmatpush3.bf16.msra.mxu0 %v2078_v38  ;;  %v2189_v3 = vmov 0.0|0.0  }
  0x2a   : > { %1904 = vmatmul.mubr.f32.vlgmr.msra.gmra.mrb[0].mxu1 %v587_v14  ;;  %v622_v31 = vcombine.low %v605_v24, %v619_v25  ;;  %v631_v32 = vrot.slane %v1745_v27, %v2428_v1  ;;  %2083 = vmatprep.subr.bf16.mxu0 %v2082_v41  ;;  %v2086_v44 = vpack.c.bf16 %v1054_v43, %v1053_v42 }
  0x2b   : > { %v638_v34 = vrot.slane %v1746_v29, %v2428_v1  ;;  %v2090_v47 = vpack.c.bf16 %v1056_v46, %v1055_v45  ;;  %v2094_v51 = vpack.c.bf16 %v1058_v50, %v1057_v49  ;;  %v2098_v54 = vpack.c.bf16 %v1060_v53, %v1059_v52  ;;  %2110 = vmatprep.subr.bf16.mxu1 %v2189_v3 }
  0x2c   : > { %722 = vmatmul.mubr.f32.gmra.mrb[2].mxu0 %v585_v6  ;;  %1906 = vmatprep.mubr.f32.mxu1 %v622_v31  ;;  %v639_v35 = vcombine.high %v631_v32, %v631_v32  ;;  %v2102_v57 = vpack.c.bf16 %v1062_v56, %v1061_v55  ;;  %v2106_v60 = vpack.c.bf16 %v1064_v59, %v1063_v58 }
  0x2d   : > { %726 = vmatprep.mubr.f32.mxu0 %v621_v28  ;;  %2085 = vmatpush3.bf16.msra.mxu0 %v2082_v41  ;;  %v2111_v4 = vpack.c.bf16 %v1330_v2, %v1329_v61  ;;  %v905_v7 = vcombine.high %v1747_v5, %v1747_v5  ;;  %v2585_v15 = vrot.slane %v1747_v5, %v2428_v1 }
  0x2e   : > { %1907 = vmatmul.mubr.f32.gmra.mrb[2].mxu1 %v638_v34  ;;  %2087 = vmatprep.subr.bf16.mxu0 %v2086_v44 }
  0x2f   : > { %2112 = vmatpush3.bf16.msra.mxu1 %v2111_v4  ;;  %v2588_v62 = vrot.slane %v905_v7, %v2428_v1  ;;  %v2593_v16 = vcombine.high %v2585_v15, %v2585_v15 }
  0x30   : > { %727 = vmatmul.mubr.f32.gmra.mrb[4].mxu0 %v620_v33  ;;  %2113 = vmatprep.subr.bf16.mxu1 %v2189_v3 }
  0x31   : > { %731 = vmatprep.mubr.f32.mxu0 %v639_v35  ;;  %2089 = vmatpush3.bf16.msra.mxu0 %v2086_v44  ;;  %v921_v22 = vcombine.high %v2588_v62, %v2588_v62  ;;  %v2606_v35 = vsub.s32 0, %v2368_v48 }
  0x32   : > { %2091 = vmatprep.subr.bf16.mxu0 %v2090_v47 }
  0x34   : > { %732 = vmatmul.mubr.f32.gmra.mrb[6].mxu0 %v631_v32 }
  0x35   : > { %2093 = vmatpush3.bf16.msra.mxu0 %v2090_v47 }
  0x36   : > { %2095 = vmatprep.subr.bf16.mxu0 %v2094_v51 }
  0x39   : > { %2097 = vmatpush3.bf16.msra.mxu0 %v2094_v51 }
  0x3a   : > { %2099 = vmatprep.subr.bf16.mxu0 %v2098_v54 }
  0x3d   : > { %2101 = vmatpush3.bf16.msra.mxu0 %v2098_v54 }
  0x3e   : > { %2103 = vmatprep.subr.bf16.mxu0 %v2102_v57 }
  0x41   : > { %2105 = vmatpush3.bf16.msra.mxu0 %v2102_v57 }
  0x42   : > { %2107 = vmatprep.subr.bf16.mxu0 %v2106_v60 }
  0x45   : > { %2109 = vmatpush3.bf16.msra.mxu0 %v2106_v60 }
  0x46   : > { %2134 = vmatprep.subr.bf16.mxu0 %v2189_v3 }
  0xfb   : > { %v1787_v8 = vpop.f32.mrb[0].mxu0 }
  0xfc   : > { %v1788_v9 = vpop.f32.mrb[1].mxu0 }
  0xfd   : > { %v1905_v13 = vpop.f32.mrb[0].mxu1  ;;  %v1789_v14 = vadd.f32 %v1788_v9, %v1787_v8 }
  0xfe   : > { %v803_v10 = vpop.f32.mrb[1].mxu1 }
  0xff   : > { %v804_v63 = vadd.f32 %v1789_v14, %v803_v10  ;;  %v1790_v11 = vpop.f32.mrb[2].mxu0 }
 0x100   : > { %v1791_v17 = vpop.f32.mrb[3].mxu0 }
 0x101   : > { %v826_v18 = vcombine.high %v804_v63, %v804_v63  ;;  %v833_v19 = vrot.slane %v804_v63, %v2428_v1  ;;  %v1792_v20 = vadd.f32 %v1791_v17, %v1790_v11  ;;  %v1908_v21 = vpop.f32.mrb[2].mxu1 }
 0x102   : > { %v813_v23 = vpop.f32.mrb[3].mxu1 }
 0x103   : > { %v840_v24 = vrot.slane %v826_v18, %v2428_v1  ;;  %v841_v0 = vcombine.high %v833_v19, %v833_v19  ;;  %v2599_v6 = vadd.f32 %v2585_v15, %v833_v19  ;;  %v809_v12 = vadd.f32 %v1905_v13, %v1792_v20  ;;  %v1793_v26 = vpop.f32.mrb[4].mxu0 }
 0x104   : > { %v1794_v25 = vpop.f32.mrb[5].mxu0 }
 0x105   : > { %v842_v27 = vcombine.high %v840_v24, %v840_v24  ;;  %v927_v28 = vadd.f32 %v2593_v16, %v841_v0  ;;  %v928_v29 = vadd.f32 %v2588_v62, %v840_v24  ;;  %v940_v31 = vmax.f32 %v2599_v6, 0.0 }
 0x106   : > { %v843_v32 = vcombine.high %v809_v12, %v809_v12  ;;  %v850_v33 = vrot.slane %v809_v12, %v2428_v1  ;;  %v1795_v34 = vadd.f32 %v1794_v25, %v1793_v26 }
 0x107   : > { %v929_v36 = vadd.f32 %v921_v22, %v842_v27  ;;  %v2608_v37 = vmax.f32 %v927_v28, 0.0  ;;  %v2610_v38 = vmax.f32 %v928_v29, 0.0  ;;  %v1748_v39 = vrot.slane %v940_v31, 9  ;;  %v1796_v40 = vpop.f32.mrb[6].mxu0 }
 0x108   : > { %v857_v41 = vrot.slane %v843_v32, %v2428_v1  ;;  %v858_v42 = vcombine.high %v850_v33, %v850_v33  ;;  %v930_v43 = vadd.f32 %v2585_v15, %v850_v33  ;;  %v814_v44 = vadd.f32 %v1795_v34, %v813_v23  ;;  %v1797_v45 = vpop.f32.mrb[7].mxu0 }
 0x109   : > { %v2618_v46 = vmax.f32 %v929_v36, 0.0  ;;  %v977_v47 = vrot.slane %v2608_v37, 7  ;;  %v980_v49 = vrot.slane %v2610_v38, 7  ;;  %v1798_v50 = vadd.f32 %v1797_v45, %v1796_v40 }
 0x10a   : > { %v859_v51 = vcombine.high %v857_v41, %v857_v41  ;;  %v931_v52 = vadd.f32 %v2593_v16, %v858_v42  ;;  %v2624_v53 = vadd.f32 %v2588_v62, %v857_v41  ;;  %v2626_v54 = vmax.f32 %v930_v43, 0.0 }
 0x10b   : > { %v979_v55 = vrot.slane %v977_v47, 2  ;;  %v982_v56 = vrot.slane %v980_v49, 2  ;;  %v983_v57 = vrot.slane %v2618_v46, 7  ;;  %v860_v58 = vcombine.high %v814_v44, %v814_v44 }
 0x10c   : > { %v933_v59 = vadd.f32 %v2585_v15, %v859_v51  ;;  %v2631_v60 = vmax.f32 %v931_v52, 0.0  ;;  %v946_v61 = vmax.f32 %v2624_v53, 0.0  ;;  %v986_v2 = vrot.slane %v2626_v54, 7 }
 0x10d   : > { %v985_v4 = vrot.slane %v983_v57, 2  ;;  %v867_v5 = vrot.slane %v814_v44, %v2428_v1  ;;  %v874_v7 = vrot.slane %v860_v58, %v2428_v1  ;;  %v819_v8 = vadd.f32 %v1908_v21, %v1798_v50 }
 0x10e   : > { %v947_v13 = vmax.f32 %v933_v59, 0.0  ;;  %v988_v14 = vrot.slane %v986_v2, 2  ;;  %v989_v10 = vrot.slane %v2631_v60, 7  ;;  %v992_v63 = vrot.slane %v946_v61, 7 }
 0x10f   : > { %v875_v11 = vcombine.high %v867_v5, %v867_v5  ;;  %v876_v17 = vcombine.high %v874_v7, %v874_v7  ;;  %v934_v18 = vadd.f32 %v2593_v16, %v867_v5  ;;  %v936_v19 = vadd.f32 %v921_v22, %v874_v7 }
 0x110   : > { %v991_v20 = vrot.slane %v989_v10, 2  ;;  %v1749_v23 = vrot.slane %v947_v13, 9  ;;  %v883_v21 = vrot.slane %v819_v8, %v2428_v1  ;;  %v978_v24 = vsel %vm2638_vm8, %v1748_v39, %v977_v47 }
 0x111   : > { %v935_v0 = vadd.f32 %v2588_v62, %v875_v11  ;;  %v937_v12 = vadd.f32 %v2585_v15, %v876_v17  ;;  %v948_v26 = vmax.f32 %v934_v18, 0.0  ;;  %v2651_v25 = vmax.f32 %v936_v19, 0.0 }
 0x112   : > { %v884_v27 = vcombine.high %v883_v21, %v883_v21  ;;  %v938_v28 = vadd.f32 %v2593_v16, %v883_v21  ;;  %v981_v22 = vsel %vm2638_vm8, %v979_v55, %v980_v49  ;;  %v984_v29 = vsel %vm2638_vm8, %v982_v56, %v983_v57 }
 0x113   : > { %v949_v32 = vmax.f32 %v935_v0, 0.0  ;;  %v2658_v33 = vmax.f32 %v937_v12, 0.0  ;;  %v996_v34 = vrot.slane %v948_v26, 7  ;;  %v1002_v36 = vrot.slane %v2651_v25, 7 }
 0x114   : > { %v939_v15 = vadd.f32 %v2588_v62, %v884_v27  ;;  %v952_v39 = vmax.f32 %v938_v28, 0.0  ;;  %v987_v40 = vsel %vm2638_vm8, %v985_v4, %v986_v2  ;;  %v990_v16 = vsel %vm2638_vm8, %v988_v14, %v989_v10 }
 0x115   : > { %v998_v41 = vrot.slane %v996_v34, 2  ;;  %v999_v42 = vrot.slane %v949_v32, 7  ;;  %v1004_v43 = vrot.slane %v1002_v36, 2  ;;  %v1005_v44 = vrot.slane %v2658_v33, 7 }
 0x116   : > { %v953_v45 = vmax.f32 %v939_v15, 0.0  ;;  %v1008_v47 = vrot.slane %v952_v39, 7  ;;  %v993_v49 = vsel %vm2638_vm8, %v991_v20, %v992_v63  ;;  %v997_v62 = vsel %vm2638_vm8, %v1749_v23, %v996_v34 }
 0x117   : > { %v1001_v50 = vrot.slane %v999_v42, 2  ;;  %v1007_v51 = vrot.slane %v1005_v44, 2  ;;  %v1000_v52 = vsel %vm2638_vm8, %v998_v41, %v999_v42  ;;  %v1025_v55 = vmax.f32 %v940_v31, %v978_v24 }
 0x118   : > { %v1010_v56 = vrot.slane %v1008_v47, 2  ;;  %v1011_v57 = vrot.slane %v953_v45, 7  ;;  %v1026_v58 = vmax.f32 %v2608_v37, %v981_v22  ;;  %v1027_v59 = vmax.f32 %v2610_v38, %v984_v29 }
 0x119   : > { %v1028_v2 = vmax.f32 %v2618_v46, %v987_v40  ;;  %v1029_v4 = vmax.f32 %v2626_v54, %v990_v16  ;;  %v1030_v5 = vmax.f32 %v2631_v60, %v993_v49  ;;  %v1031_v7 = vmax.f32 %v947_v13, %v997_v62  ;;  %v1334_v62 = vld [vmem:[%s2864_s5 + $0x28] sm:$0xff] }
 0x11a   : > { %v1032_v8 = vmax.f32 %v948_v26, %v1000_v52  ;;  %v1037_v14 = vmax.f32 %v1025_v55, %v2608_v37  ;;  %v1038_v6 = vmax.f32 %v1026_v58, %v2610_v38  ;;  %v1039_v31 = vmax.f32 %v1027_v59, %v2618_v46  ;;  %v1336_v52 = vld [vmem:[%s2864_s5 + $0x38] sm:$0xff]  ;;  %v1339_v59 = vld [vmem:[%s2864_s5 + $0x50] sm:$0xff] }
 0x11b   : > { %v1040_v10 = vmax.f32 %v1028_v2, %v2626_v54  ;;  %v1041_v63 = vmax.f32 %v1029_v4, %v2631_v60  ;;  %v1042_v11 = vmax.f32 %v1030_v5, %v946_v61  ;;  %v1043_v17 = vmax.f32 %v1031_v7, %v948_v26  ;;  %v1340_v2 = vld [vmem:[%s2864_s5 + $0x58] sm:$0xff]  ;;  %v1341_v5 = vld [vmem:[%s2864_s5 + $0x60] sm:$0xff]  ;;  %v1342_v7 = vld [vmem:[%s2864_s5 + $0x68] sm:$0xff] }
 0x11c   : > { %v1044_v18 = vmax.f32 %v1032_v8, %v949_v32  ;;  %v1080_v19 = vrot.slane %v1037_v14, %v2606_v35  ;;  %v1084_v13 = vrot.slane %v1038_v6, %v2606_v35  ;;  %v1088_v20 = vrot.slane %v1039_v31, %v2606_v35  ;;  %v1343_v14 = vld [vmem:[%s2864_s5 + $0x70] sm:$0xff]  ;;  %v1344_v6 = vld [vmem:[%s2864_s5 + $0x78] sm:$0xff] }
 0x11d   : > { %v1092_v37 = vrot.slane %v1040_v10, %v2606_v35  ;;  %v1096_v38 = vrot.slane %v1041_v63, %v2606_v35  ;;  %v1100_v46 = vrot.slane %v1042_v11, %v2606_v35  ;;  %v1104_v54 = vrot.slane %v1043_v17, %v2606_v35  ;;  %v1750_v63 = vld [vmem:[%s2863_s4] ss:$0 sm:$0xff] }
 0x11e   : > { %v1108_v60 = vrot.slane %v1044_v18, %v2606_v35  ;;  %v1126_v53 = vsel %vm1125_vm9, %v1084_v13, %v1080_v19  ;;  %v1003_v61 = vsel %vm2638_vm8, %v1001_v50, %v1002_v36  ;;  %v1006_v23 = vsel %vm2638_vm8, %v1004_v43, %v1005_v44 }
 0x11f   : > { %v1127_v21 = vsel %vm969_vm3, %v1088_v20, %v1126_v53  ;;  %v1009_v24 = vsel %vm2638_vm8, %v1007_v51, %v1008_v47  ;;  %v1012_v0 = vsel %vm2638_vm8, %v1010_v56, %v1011_v57  ;;  %v1033_v12 = vmax.f32 %v949_v32, %v1003_v61  ;;  %v1335_v51 = vld [vmem:[%s2864_s5 + $0x30] sm:$0xff]  ;;  %v1337_v56 = vld [vmem:[%s2864_s5 + $0x40] sm:$0xff]  ;;  %v1338_v57 = vld [vmem:[%s2864_s5 + $0x48] sm:$0xff] }
 0x120   : > { %v1129_v26 = vsel %vm1128_vm10, %v1092_v37, %v1127_v21  ;;  %v1034_v27 = vmax.f32 %v2651_v25, %v1006_v23  ;;  %v1035_v28 = vmax.f32 %v2658_v33, %v1009_v24  ;;  %v1036_v22 = vmax.f32 %v952_v39, %v1012_v0 }
 0x121   : > { %v1130_v29 = vsel %vm971_vm4, %v1096_v38, %v1129_v26  ;;  %v1045_v34 = vmax.f32 %v1033_v12, %v2651_v25  ;;  %v2120_v55 = vpack.c.bf16 %v1336_v52, %v1335_v51  ;;  %v2123_v58 = vpack.c.bf16 %v1338_v57, %v1337_v56 }
 0x122   : > { %v1132_v36 = vsel %vm1131_vm11, %v1100_v46, %v1130_v29  ;;  %v1046_v15 = vmax.f32 %v1034_v27, %v2658_v33  ;;  %v1047_v40 = vmax.f32 %v1035_v28, %v952_v39  ;;  %v1048_v9 = vmax.f32 %v1036_v22, %v953_v45  ;;  %v1331_v39 = vld [vmem:[%s2864_s5 + $0x10] sm:$0xff]  ;;  %v1332_v45 = vld [vmem:[%s2864_s5 + $0x18] sm:$0xff] }
 0x123   : > { %v1133_v32 = vsel %vm973_vm5, %v1104_v54, %v1132_v36  ;;  %v1112_v16 = vrot.slane %v1045_v34, %v2606_v35  ;;  %v2114_v49 = vpack.c.bf16 %v1332_v45, %v1331_v39  ;;  %v2126_v4 = vpack.c.bf16 %v1340_v2, %v1339_v59 }
 0x124   : > { %v1135_v41 = vsel %vm1134_vm12, %v1108_v60, %v1133_v32  ;;  %v1116_v42 = vrot.slane %v1046_v15, %v2606_v35  ;;  %v1120_v43 = vrot.slane %v1047_v40, %v2606_v35  ;;  %v1124_v44 = vrot.slane %v1048_v9, %v2606_v35  ;;  %v1333_v35 = vld [vmem:[%s2864_s5 + $0x20] sm:$0xff] }
 0x125   : > { %1941 = vmatprep.mubr.f32.mxu0 %v1135_v41  ;;  %2115 = vmatpush3.bf16.msra.mxu1 %v2114_v49  ;;  %v2117_v50 = vpack.c.bf16 %v1334_v62, %v1333_v35  ;;  %v2129_v8 = vpack.c.bf16 %v1342_v7, %v1341_v5  ;;  %v2132_v31 = vpack.c.bf16 %v1344_v6, %v1343_v14  ;;  %v2191_v10 = vmov 0.0  }
 0x126   : > { %v1136_v25 = vsel %vm1125_vm9, %v1116_v42, %v1112_v16  ;;  %2116 = vmatprep.subr.bf16.mxu1 %v2189_v3  ;;  %1976 = vmatprep.mubr.msk.f32.mxu1 %vm2190_vm13, %v2191_v10  ;;  %v1262_v11 = vrot.slane %v1750_v63, %v2428_v1  ;;  %v1255_v17 = vcombine.high %v1750_v63, %v1750_v63 }
 0x127   : > { %v1137_v47 = vsel %vm969_vm3, %v1120_v43, %v1136_v25 }
 0x128   : > { %v1138_v33 = vsel %vm1128_vm10, %v1124_v44, %v1137_v47  ;;  %v1270_v18 = vcombine.high %v1262_v11, %v1262_v11  ;;  %v1269_v20 = vrot.slane %v1255_v17, %v2428_v1 }
 0x129   : > { %1942 = vmatmul.mubr.f32.vlgmr.msra.gmra.mrb[8].mxu0 %v1138_v33  ;;  %2118 = vmatpush3.bf16.msra.mxu1 %v2117_v50 }
 0x12a   : > { %2119 = vmatprep.subr.bf16.mxu1 %v2189_v3  ;;  %2011 = vmatprep.mubr.msk.f32.mxu0 %vm2190_vm13, %v2191_v10 }
 0x12d   : > { %2121 = vmatpush3.bf16.msra.mxu1 %v2120_v55 }
 0x12e   : > { %2122 = vmatprep.subr.bf16.mxu1 %v2189_v3 }
 0x131   : > { %2124 = vmatpush3.bf16.msra.mxu1 %v2123_v58 }
 0x132   : > { %2125 = vmatprep.subr.bf16.mxu1 %v2189_v3 }
 0x135   : > { %2127 = vmatpush3.bf16.msra.mxu1 %v2126_v4 }
 0x136   : > { %2128 = vmatprep.subr.bf16.mxu1 %v2189_v3 }
 0x139   : > { %2130 = vmatpush3.bf16.msra.mxu1 %v2129_v8 }
 0x13a   : > { %2131 = vmatprep.subr.bf16.mxu1 %v2189_v3 }
 0x13d   : > { %2133 = vmatpush3.bf16.msra.mxu1 %v2132_v31 }
 0x1fc   : > { %v1943_v19 = vpop.f32.mrb[8].mxu0 }
 0x1fd   : > { %v1241_v13 = vrot.slane %v1943_v19, %v2428_v1  ;;  %v1207_v37 = vpop.f32.mrb[9].mxu0 }
 0x1fe   : > { %v1218_v38 = vcombine.high %v1207_v37, %v1207_v37  ;;  %v1225_v46 = vrot.slane %v1207_v37, %v2428_v1 }
 0x1ff   : > { %v1242_v54 = vcombine.high %v1241_v13, %v1241_v13  ;;  %v1278_v60 = vadd.f32 %v1270_v18, %v1241_v13 }
 0x200   : > { %v1232_v53 = vrot.slane %v1218_v38, %v2428_v1  ;;  %v1233_v61 = vcombine.high %v1225_v46, %v1225_v46  ;;  %v1274_v23 = vadd.f32 %v1262_v11, %v1225_v46 }
 0x201   : > { %v1279_v21 = vadd.f32 %v1269_v20, %v1242_v54  ;;  %v1284_v24 = vmax.f32 %v1278_v60, 0.0 }
 0x202   : > { %v1234_v0 = vcombine.high %v1232_v53, %v1232_v53  ;;  %v1275_v12 = vadd.f32 %v1270_v18, %v1233_v61  ;;  %v1276_v26 = vadd.f32 %v1269_v20, %v1232_v53  ;;  %v1280_v27 = vmax.f32 %v1274_v23, 0.0  ;;  %v1751_v53 = vld [vmem:[%s2865_s6] ss:$0 sm:$0xff] }
 0x203   : > { %v1285_v28 = vmax.f32 %v1279_v21, 0.0  ;;  %v1315_v22 = vsel %vm1286_vm14, %v1284_v24, -inf  ;;  %v1577_v24 = vld [vmem:[%s2866_s7] sm:$0xff] }
 0x204   : > { %v1316_v29 = vrot.slane %v1315_v22, 4  ;;  %v1277_v34 = vadd.f32 %v1262_v11, %v1234_v0  ;;  %v1281_v36 = vmax.f32 %v1275_v12, 0.0  ;;  %v1282_v15 = vmax.f32 %v1276_v26, 0.0  ;;  %v1578_v0 = vld [vmem:[%s2866_s7 + $0x8] sm:$0xff]  ;;  %v1579_v12 = vld [vmem:[%s2866_s7 + $0x10] sm:$0xff] }
 0x205   : > { %v1322_v40 = vsel %vm1286_vm14, %v1285_v28, -inf  ;;  %v1287_v9 = vsel %vm1286_vm14, %v1280_v27, -inf  ;;  %v2135_v26 = vpack.c.bf16 %v1578_v0, %v1577_v24  ;;  %v1580_v27 = vld [vmem:[%s2866_s7 + $0x18] sm:$0xff]  ;;  %v1585_v24 = vld [vmem:[%s2866_s7 + $0x40] sm:$0xff]  ;;  %v1586_v0 = vld [vmem:[%s2866_s7 + $0x48] sm:$0xff] }
 0x206   : > { %v1317_v1 = vmax.f32 %v1315_v22, %v1316_v29  ;;  %v1323_v32 = vrot.slane %v1322_v40, 4  ;;  %v1283_v16 = vmax.f32 %v1277_v34, 0.0  ;;  %v1288_v41 = vrot.slane %v1287_v9, 4  ;;  %v1581_v22 = vld [vmem:[%s2866_s7 + $0x20] sm:$0xff]  ;;  %v1582_v29 = vld [vmem:[%s2866_s7 + $0x28] sm:$0xff] }
 0x207   : > { %v1294_v42 = vsel %vm1286_vm14, %v1281_v36, -inf  ;;  %v1301_v43 = vsel %vm1286_vm14, %v1282_v15, -inf  ;;  %2136 = vmatpush3.bf16.msra.mxu0 %v2135_v26  ;;  %v2138_v28 = vpack.c.bf16 %v1580_v27, %v1579_v12  ;;  %v2141_v34 = vpack.c.bf16 %v1582_v29, %v1581_v22  ;;  %v1587_v26 = vld [vmem:[%s2866_s7 + $0x50] sm:$0xff]  ;;  %v1588_v27 = vld [vmem:[%s2866_s7 + $0x58] sm:$0xff]  ;;  %v1589_v22 = vld [vmem:[%s2866_s7 + $0x60] sm:$0xff] }
 0x208   : > { %v1324_v44 = vmax.f32 %v1322_v40, %v1323_v32  ;;  %v1289_v25 = vmax.f32 %v1287_v9, %v1288_v41  ;;  %v1295_v47 = vrot.slane %v1294_v42, 4  ;;  %v1302_v33 = vrot.slane %v1301_v43, 4  ;;  %2137 = vmatprep.subr.bf16.mxu0 %v2189_v3  ;;  %v1590_v29 = vld [vmem:[%s2866_s7 + $0x68] sm:$0xff] }
 0x209   : > { %v1308_v39 = vsel %vm1286_vm14, %v1283_v16, -inf  ;;  %v1318_v45 = vrot.slane %v1317_v1, 2  ;;  %v2193_v36 = vmov 1966171168   ;;  %v2147_v12 = vpack.c.bf16 %v1586_v0, %v1585_v24 }
 0x20a   : > { %v1290_v49 = vrot.slane %v1289_v25, 2  ;;  %v1296_v35 = vmax.f32 %v1294_v42, %v1295_v47  ;;  %v1325_v62 = vrot.slane %v1324_v44, 2  ;;  %v1303_v50 = vmax.f32 %v1301_v43, %v1302_v33 }
 0x20b   : > { %v1309_v51 = vrot.slane %v1308_v39, 4  ;;  %v1319_v58 = vmax.f32 %v1317_v1, %v1318_v45  ;;  %2139 = vmatpush3.bf16.msra.mxu0 %v2138_v28  ;;  %v1440_v15 = vunpack.c.l.s4 %v2193_v36  ;;  %v2150_v28 = vpack.c.bf16 %v1588_v27, %v1587_v26  ;;  %v1591_v36 = vld [vmem:[%s2866_s7 + $0x70] sm:$0xff] }
 0x20c   : > { %v1291_v52 = vmax.f32 %v1289_v25, %v1290_v49  ;;  %v1297_v55 = vrot.slane %v1296_v35, 2  ;;  %v1304_v56 = vrot.slane %v1303_v50, 2  ;;  %v1326_v4 = vmax.f32 %v1324_v44, %v1325_v62  ;;  %2140 = vmatprep.subr.bf16.mxu0 %v2189_v3 }
 0x20d   : > { %v1310_v57 = vmax.f32 %v1308_v39, %v1309_v51  ;;  %v1320_v31 = vrot.slane %v1319_v58, 1  ;;  %v1441_v40 = vunpack.c.0.s8 %v1440_v15  ;;  %v1592_v15 = vld [vmem:[%s2866_s7 + $0x78] sm:$0xff] }
 0x20e   : > { %v1292_v59 = vrot.slane %v1291_v52, 1  ;;  %v1298_v2 = vmax.f32 %v1296_v35, %v1297_v55  ;;  %v1305_v5 = vmax.f32 %v1303_v50, %v1304_v56  ;;  %v1327_v11 = vrot.slane %v1326_v4, 1 }
 0x20f   : > { %v1311_v7 = vrot.slane %v1310_v57, 2  ;;  %v1321_v37 = vmax.f32 %v1319_v58, %v1320_v31  ;;  %2142 = vmatpush3.bf16.msra.mxu0 %v2141_v34  ;;  %v1444_v9 = vsub.s32 %v1441_v40, %v2368_v48  ;;  %v2153_v34 = vpack.c.bf16 %v1590_v29, %v1589_v22 }
 0x210   : > { %v1299_v8 = vrot.slane %v1298_v2, 1  ;;  %v1306_v14 = vrot.slane %v1305_v5, 1  ;;  %v1293_v10 = vmax.f32 %v1291_v52, %v1292_v59  ;;  %v1328_v38 = vmax.f32 %v1326_v4, %v1327_v11  ;;  %2143 = vmatprep.subr.bf16.mxu0 %v2189_v3 }
 0x211   : > { %v1312_v6 = vmax.f32 %v1310_v57, %v1311_v7  ;;  %v1551_v11 = vand.u32 127, %v338_v30  ;;  %v1583_v30 = vld [vmem:[%s2866_s7 + $0x30] sm:$0xff]  ;;  %v2156_v40 = vpack.c.bf16 %v1592_v15, %v1591_v36 }
 0x212   : > { %v1300_v63 = vmax.f32 %v1298_v2, %v1299_v8  ;;  %v1307_v17 = vmax.f32 %v1305_v5, %v1306_v14 }
 0x213   : > { %v1313_v18 = vrot.slane %v1312_v6, 1  ;;  %vm1552_vm0 = vcmp.lt.s32.totalorder %v1551_v11, 20 }
 0x214   : > { %v1358_v19 = vsel %vm1125_vm9, %v1300_v63, %v1293_v10 }
 0x215   : > { %v1314_v13 = vmax.f32 %v1312_v6, %v1313_v18  ;;  %v1359_v20 = vsel %vm969_vm3, %v1307_v17, %v1358_v19 }
 0x217   : > { %v1360_v46 = vsel %vm1128_vm10, %v1314_v13, %v1359_v20 }
 0x218   : > { %v1361_v54 = vsel %vm971_vm4, %v1321_v37, %v1360_v46  ;;  %v2194_v37 = vmov -1e+30  }
 0x219   : > { %v1362_v60 = vsel %vm1131_vm11, %v1328_v38, %v1361_v54  ;;  %v1553_v38 = vsel %vm1552_vm0, 0.0, %v2194_v37 }
 0x21a   : > { %1977 = vmatmul.mubr.f32.vlgmr.msra.gmra.mrb[4].mxu1 %v1362_v60 }
 0x2ed   : > { %v1430_v61 = vpop.f32.mrb[4].mxu1 }
 0x2ee   : > { %v1431_v23 = vadd.f32 %v1751_v53, %v1430_v61  ;;  %v1978_v21 = vpop.f32.mrb[5].mxu1 }
 0x2f0   : > { %1434 = vrot.lane.b32.xlu0 %v1431_v23, %s2192_s19 }
 0x362   : > { %v1435_v1 = vpop.permute.xlu0 %1434 }
 0x363   : > { %v1436_v32 = vmul.f32 %v1435_v1, %v1431_v23  ;;  %v1584_v23 = vld [vmem:[%s2866_s7 + $0x38] sm:$0xff] }
 0x364   : > { %v2144_v21 = vpack.c.bf16 %v1584_v23, %v1583_v30 }
 0x365   : > { %v1438_v16 = vcombine.high %v1436_v32, %v1436_v32  ;;  %v1445_v41 = vrot.slane %v1436_v32, %v1444_v9 }
 0x366   : > { %2145 = vmatpush3.bf16.msra.mxu0 %v2144_v21 }
 0x367   : > { %v1452_v42 = vrot.slane %v1438_v16, %v1444_v9  ;;  %v1453_v43 = vcombine.high %v1445_v41, %v1445_v41  ;;  %v1461_v44 = vrot.slane %v1445_v41, %v1444_v9  ;;  %2146 = vmatprep.subr.bf16.mxu0 %v2189_v3 }
 0x369   : > { %v1454_v25 = vcombine.high %v1452_v42, %v1452_v42  ;;  %v1475_v47 = vrot.slane %v1453_v43, %v1444_v9  ;;  %v1483_v33 = vcombine.high %v1461_v44, %v1461_v44  ;;  %v1468_v39 = vrot.slane %v1452_v42, %v1444_v9 }
 0x36a   : > { %2148 = vmatpush3.bf16.msra.mxu0 %v2147_v12 }
 0x36b   : > { %v1482_v45 = vrot.slane %v1454_v25, %v1444_v9  ;;  %v1484_v49 = vcombine.high %v1475_v47, %v1475_v47  ;;  %v1485_v35 = vcombine.low %v1461_v44, %v1475_v47  ;;  %v1499_v50 = vrot.slane %v1483_v33, %v1444_v9  ;;  %2149 = vmatprep.subr.bf16.mxu0 %v2189_v3 }
 0x36d   : > { %v1492_v62 = vrot.slane %v1485_v35, %v1444_v9  ;;  %v1508_v51 = vcombine.low %v1484_v49, %v1468_v39  ;;  %v1522_v48 = vrot.slane %v1482_v45, %v1444_v9  ;;  %v2195_v45 = vmov 1.0  }
 0x36e   : > { %2151 = vmatpush3.bf16.msra.mxu0 %v2150_v28 }
 0x36f   : > { %v1500_v52 = vcombine.low %v1492_v62, %v1499_v50  ;;  %v1515_v55 = vrot.slane %v1508_v51, %v1444_v9  ;;  %2152 = vmatprep.subr.bf16.mxu0 %v2189_v3 }
 0x371   : > { %v1507_v56 = vrot.slane %v1500_v52, %v1444_v9  ;;  %v1523_v57 = vcombine.low %v1515_v55, %v1522_v48 }
 0x372   : > { %2154 = vmatpush3.bf16.msra.mxu0 %v2153_v34 }
 0x373   : > { %v1530_v58 = vrot.slane %v1523_v57, %v1444_v9  ;;  %v1534_v59 = vsel %vm1533_vm15, %v1507_v56, 0.0  ;;  %2155 = vmatprep.subr.bf16.mxu0 %v2189_v3  ;;  %v1554_v3 = vsel %vm1552_vm0, 0.0, %v2195_v45 }
 0x374   : > { %v1535_v2 = vrot.slane %v1534_v59, 4 }
 0x375   : > { %v1541_v4 = vsel %vm1533_vm15, %v1530_v58, 0.0 }
 0x376   : > { %v1536_v5 = vadd.f32 %v1535_v2, %v1534_v59  ;;  %v1542_v7 = vrot.slane %v1541_v4, 4  ;;  %2157 = vmatpush3.bf16.msra.mxu0 %v2156_v40 }
 0x378   : > { %v1537_v8 = vrot.slane %v1536_v5, 2  ;;  %v1543_v14 = vadd.f32 %v1542_v7, %v1541_v4 }
 0x37a   : > { %v1538_v6 = vadd.f32 %v1537_v8, %v1536_v5  ;;  %v1544_v31 = vrot.slane %v1543_v14, 2 }
 0x37c   : > { %v1539_v10 = vrot.slane %v1538_v6, 1  ;;  %v1545_v63 = vadd.f32 %v1544_v31, %v1543_v14 }
 0x37e   : > { %v1540_v17 = vadd.f32 %v1539_v10, %v1538_v6  ;;  %v1546_v18 = vrot.slane %v1545_v63, 1 }
 0x380   : > { %v1547_v19 = vadd.f32 %v1546_v18, %v1545_v63  ;;  %v1548_v13 = vmul.f32 0.33333334, %v1540_v17 }
 0x382   : > { %v1549_v20 = vmul.f32 0.33333334, %v1547_v19  ;;  %v1555_v54 = vadd.f32 %v1553_v38, %v1548_v13 }
 0x384   : > { %v1556_v46 = vadd.f32 %v1553_v38, %v1549_v20 }
 0x386   : > { %v1559_v60 = vrot.slane %v1556_v46, 7 }
 0x388   : > { %v1560_v53 = vsel %vm1125_vm9, %v1559_v60, %v1555_v54 }
 0x389   : > { %v1562_v61 = vsel %vm1286_vm14, %v1560_v53, -inf }
 0x38a   : > { %1563 = vmax.xlane.f32.xlu0 %v1562_v61 }
 0x417   : > { %v1564_v9 = vpop.xlane.xlu0 %1563 }
 0x418   : > { %v1566_v1 = vrot.slane %v1564_v9, 1  ;;  %v1569_v32 = vsub.f32 %v1548_v13, %v1564_v9 }
 0x41a   : > { %v1570_v16 = vsub.f32 %v1549_v20, %v1566_v1  ;;  %v1571_v41 = vadd.f32 %v1569_v32, %v1553_v38 }
 0x41c   : > { %v1572_v42 = vadd.f32 %v1570_v16, %v1553_v38  ;;  %v1573_v43 = vmul.f32 1.442695, %v1571_v41 }
 0x41e   : > { %v1575_v44 = vmul.f32 1.442695, %v1572_v42 }
 0x420   : > { %2174 = vpow2.f32 %v1575_v44 }
 0x421   : > { %2176 = vpow2.f32 %v1573_v43 }
 0x42a   : > { %v2175_v25 = vpop.eup %2174 }
 0x42b   : > { %v1595_v47 = vrot.slane %v2175_v25, 7  ;;  %v2177_v33 = vpop.eup %2176 }
 0x42d   : > { %v1596_v39 = vsel %vm1125_vm9, %v1595_v47, %v2177_v33 }
 0x42e   : > { %2012 = vmatmul.mubr.f32.vlgmr.msra.gmra.mrb[10].mxu0 %v1596_v39 }
 0x501   : > { %v1664_v49 = vpop.f32.mrb[10].mxu0 }
 0x502   : > { %v1665_v35 = vadd.f32 %v1664_v49, %v1554_v3  ;;  %v2013_v62 = vpop.f32.mrb[11].mxu0 }
 0x504   : > { %2178 = vrcp.f32 %v1665_v35 }
 0x50e   : > { %v2179_v50 = vpop.eup %2178 }
 0x50f   : > { %v1669_v51 = vmul.f32 %v2179_v50, %v1665_v35 }
 0x511   : > { %v1670_v52 = vsub.f32 2.0, %v1669_v51 }
 0x513   : > { %v1671_v55 = vmul.f32 %v2179_v50, %v1670_v52 }
 0x515   : > { %v1673_v48 = vrot.slane %v1671_v55, 1  ;;  %v1676_v56 = vmul.f32 %v2177_v33, %v1671_v55 }
 0x517   : > { %v1677_v57 = vmul.f32 %v2175_v25, %v1673_v48  ;;  %1678 = vst [vmem:[%s308_s12] sm:$0x1] %v1676_v56 }
 0x519   : > { %1679 = vst [vmem:[%s308_s12 + $0x1] sm:$0x1] %v1677_v57 }
 0x51a PF: > { %s18_s27 = sadd.s32 1, %s2186_s27  }
 0x51b   : > { %p15_p4 = scmp.ge.s32.totalorder %s18_s27, 4  }
 0x51d   :  { %17 = sbr.rel (!%p15_p4) target bundleno = 1 (0x1), region = 82 }

</bundles_post_ra>
